<compile_context>
chip_gen: v6e
topology: v6e:2x2x1
jax: 0.10.0
libtpu: 0.0.40
codegen_flags: <defaults>
</compile_context>

<pallas_src>
import jax
import jax.numpy as jnp
from jax.experimental import pallas as pl
from jax.experimental.pallas import tpu as pltpu


LANE = 1024                      # lane-dense width (multiple of 128)
SUBLANE = 8
ALIGN = SUBLANE * LANE           # 8192 elements = one full (8, LANE) f32 row-group
TARGET_STEPS = 8                 # keep >= ~8 pipeline steps to hide head/tail DMA
MIN_PALLAS_ELEMS = 256 * 1024    # below this, plain XLA fusion wins (dispatch cost)


def _cdiv(a, m):
    return -(-a // m)


def _round_up(a, m):
    return ((a + m - 1) // m) * m


def _max_tile_rows():
    """Generation-aware row-tile cap (f32, LANE lanes wide).

    v5e's default scoped VMEM is 16 MiB -> 512-row tiles (2 MiB/buffer, 8 MiB
    double-buffered in+out) are the safe ceiling.  v6e / v7x have 32 MiB
    default scoped VMEM -> 1024-row tiles (4 MiB/buffer, 16 MiB total) amortize
    the ~0.35 us per-step overhead better against their faster HBM (matters
    most on v7x).
    """
    try:
        kind = jax.devices()[0].device_kind.lower()
    except Exception:  # non-TPU / exotic backends: fall back to the safe cap
        kind = ""
    if ("v6" in kind) or ("v7" in kind):
        return 1024
    return 512


def linear_kernel(x_ref, w_ref, b_ref, o_ref):
    # x_ref: (tile_r, LANE) VMEM tile; w_ref: (1, 1) SMEM; b_ref: (1,) SMEM.
    w = w_ref[0, 0]          # scalar weight W[0, 0]
    b = b_ref[0]             # scalar bias   b[0]
    # y = x @ W.T + b  ==  x * w + b   (in_features == out_features == 1)
    o_ref[...] = x_ref[...] * w + b


def _pallas_scale_shift(x2d, w, b):
    """x2d: (rows, LANE) f32 with rows % 8 == 0 -> (rows, LANE) f32."""
    rows = x2d.shape[0]
    # Keep the grid at >= ~TARGET_STEPS steps so DMA pipelines, but never
    # exceed the generation-safe VMEM tile cap.
    tile_r = min(_max_tile_rows(),
                 max(SUBLANE, _round_up(_cdiv(rows, TARGET_STEPS), SUBLANE)))
    grid = (_cdiv(rows, tile_r),)   # partial edge blocks handled by Pallas
    n_elems = rows * LANE

    return pl.pallas_call(
        linear_kernel,
        out_shape=jax.ShapeDtypeStruct((rows, LANE), x2d.dtype),
        grid=grid,
        in_specs=[
            pl.BlockSpec((tile_r, LANE), lambda i: (i, 0)),        # x row tiles
            pl.BlockSpec(memory_space=pltpu.MemorySpace.SMEM),     # W (1, 1)
            pl.BlockSpec(memory_space=pltpu.MemorySpace.SMEM),     # b (1,)
        ],
        out_specs=pl.BlockSpec((tile_r, LANE), lambda i: (i, 0)),
        compiler_params=pltpu.CompilerParams(
            dimension_semantics=("parallel",),
        ),
        cost_estimate=pl.CostEstimate(
            flops=2 * n_elems, transcendentals=0, bytes_accessed=8 * n_elems),
    )(x2d, w, b)


def linear_regression_forward(x, w, b):
    """Forward of nn.Linear(1, 1): x (N, 1) f32, w (1, 1), b (1,) -> (N, 1)."""
    N, F = x.shape
    assert F == 1, f"LinearRegression expects in_features == 1, got F={F}"

    # Small / medium inputs: Pallas dispatch + pipeline warmup dwarfs the work.
    if N < MIN_PALLAS_ELEMS:
        return x * w[0, 0] + b[0]

    flat = x.reshape(-1)                       # (N,), free
    n_aligned = (N // ALIGN) * ALIGN           # multiple of 8*LANE; > 0 here

    # Lane-dense prefix: contiguous (n_aligned,) -> (rows, LANE) reshape.
    head2d = flat[:n_aligned].reshape(n_aligned // LANE, LANE)
    head_out = _pallas_scale_shift(head2d, w, b).reshape(-1)

    if n_aligned == N:
        return head_out.reshape(N, 1)

    # < ALIGN leftover elements: plain XLA expression, stitched once.
    tail_out = flat[n_aligned:] * w[0, 0] + b[0]
    return jnp.concatenate([head_out, tail_out]).reshape(N, 1)


if __name__ == "__main__":
    key = jax.random.PRNGKey(0)
    kx, kw, kb, kx2, kx3 = jax.random.split(key, 5)

    # Deterministic parameters consistent with nn.Linear(1, 1).
    w = jax.random.uniform(kw, (1, 1), dtype=jnp.float32, minval=-1.0, maxval=1.0)
    b = jax.random.uniform(kb, (1,), dtype=jnp.float32, minval=-1.0, maxval=1.0)

    def ref(x):
        return x @ w.T + b

    # 1) Small batch (N=8): XLA-fused fast path (no Pallas dispatch).
    x_small = jax.random.normal(kx, (8, 1), dtype=jnp.float32)
    y_small = jax.block_until_ready(linear_regression_forward(x_small, w, b))
    assert y_small.shape == (8, 1)
    assert jnp.allclose(y_small, ref(x_small), atol=1e-6, rtol=1e-6)

    # 2) Unaligned batch (N=300000): Pallas on aligned prefix + XLA tail.
    x_mid = jax.random.normal(kx2, (300_000, 1), dtype=jnp.float32)
    y_mid = jax.block_until_ready(linear_regression_forward(x_mid, w, b))
    assert y_mid.shape == (300_000, 1)
    assert jnp.allclose(y_mid, ref(x_mid), atol=1e-6, rtol=1e-6)

    # 3) Large aligned batch (N=1<<20): pure Pallas, >= 8 pipelined grid steps.
    x_big = jax.random.normal(kx3, (1 << 20, 1), dtype=jnp.float32)
    y_big = jax.block_until_ready(linear_regression_forward(x_big, w, b))
    assert y_big.shape == (1 << 20, 1)
    assert jnp.allclose(y_big, ref(x_big), atol=1e-6, rtol=1e-6)

    print("KERNEL_OK")
</pallas_src>

<mosaic_0001>
module attributes {stable_mosaic.version = 11 : i64} {
  func.func @linear_kernel(%arg0: i32, %arg1: memref<40x1024xf32, #tpu.memory_space<vmem>>, %arg2: memref<1x1xf32, #tpu.memory_space<smem>>, %arg3: memref<1xf32, #tpu.memory_space<smem>>, %arg4: memref<40x1024xf32, #tpu.memory_space<vmem>>) attributes {dimension_semantics = [#tpu.dimension_semantics<parallel>], iteration_bounds = array<i64: 8>, scalar_prefetch = 0 : i64, scratch_operands = 0 : i64, tpu.core_type = #tpu.core_type<tc>, window_params = [{transform_indices = @transform_0, window_bounds = array<i64: 40, 1024>}, {transform_indices = @transform_1, window_bounds = array<i64: 1, 1>}, {transform_indices = @transform_2, window_bounds = array<i64: 1>}, {transform_indices = @transform_3, window_bounds = array<i64: 40, 1024>}]} {
    %c0 = arith.constant 0 : index
    %c0_0 = arith.constant 0 : index
    %0 = memref.load %arg2[%c0, %c0_0] : memref<1x1xf32, #tpu.memory_space<smem>>
    %c0_1 = arith.constant 0 : index
    %1 = memref.load %arg3[%c0_1] : memref<1xf32, #tpu.memory_space<smem>>
    %c0_2 = arith.constant 0 : index
    %c0_3 = arith.constant 0 : index
    %2 = vector.load %arg1[%c0_2, %c0_3] : memref<40x1024xf32, #tpu.memory_space<vmem>>, vector<40x1024xf32>
    %3 = vector.broadcast %0 : f32 to vector<40x1024xf32>
    %4 = arith.mulf %2, %3 : vector<40x1024xf32>
    %5 = vector.broadcast %1 : f32 to vector<40x1024xf32>
    %6 = arith.addf %4, %5 : vector<40x1024xf32>
    %c0_4 = arith.constant 0 : index
    %c0_5 = arith.constant 0 : index
    %7 = vector.load %arg4[%c0_4, %c0_5] : memref<40x1024xf32, #tpu.memory_space<vmem>>, vector<40x1024xf32>
    tpu.vector_store %arg4[%c0_4, %c0_5], %6 {strides = array<i32>} : memref<40x1024xf32, #tpu.memory_space<vmem>>, vector<40x1024xf32>,
    return
  }
  func.func @transform_0(%arg0: i32) -> (i32, i32) {
    %c0_i32 = arith.constant 0 : i32
    %c0_i32_0 = arith.constant 0 : i32
    return %arg0, %c0_i32 : i32, i32
  }
  func.func @transform_1(%arg0: i32) -> (i32, i32) {
    %c0_i32 = arith.constant 0 : i32
    %c0_i32_0 = arith.constant 0 : i32
    %c0_i32_1 = arith.constant 0 : i32
    return %c0_i32, %c0_i32_0 : i32, i32
  }
  func.func @transform_2(%arg0: i32) -> i32 {
    %c0_i32 = arith.constant 0 : i32
    %c0_i32_0 = arith.constant 0 : i32
    return %c0_i32 : i32
  }
  func.func @transform_3(%arg0: i32) -> (i32, i32) {
    %c0_i32 = arith.constant 0 : i32
    %c0_i32_0 = arith.constant 0 : i32
    return %arg0, %c0_i32 : i32, i32
  }
}

</mosaic_0001>

<bundles_post_ra>
// kernel: tpu_custom_call.1
= control target key start
LH: loop header
LB: loop body
LE: loop exit
PB: predicated region body
PF: predicated region fallthrough
CT: control target
= control target key end

     0   :  { %s1005_s0 = inlined_call_operand.hbm [shape: f32[288,1024], index: 0, kind: input, shape index: {}]   ;;  %s1006_s1 = inlined_call_operand.<no memory space> [shape: f32[1,1], index: 1, kind: input, shape index: {}]   ;;  %s1007_s2 = inlined_call_operand.<no memory space> [shape: f32[1], index: 2, kind: input, shape index: {}]   ;;  %s1008_s3 = inlined_call_operand.hbm [shape: f32[288,1024], index: 3, kind: output, shape index: {}]  }
   0x1   :  { %8 = sst [smem:[#allocation2]] %s1006_s1 }
   0x2   :  { %9 = sst [smem:[#allocation3]] %s1007_s2 }
   0x3   :  { %10 = vsyncpa [#allocation5], 0 }
   0x4   :  { %12 = vsyncpa [#allocation5 + $0x1], 0 }
   0x5   :  { %13 = vsyncpa [#allocation6], 0 }
   0x6   :  { %15 = vsyncpa [#allocation6 + $0x1], 0  ;;  %s667_s16 = smov 0   ;;  %s669_s17 = smov 0  }
   0x7   :  { %s671_s18 = smov 0   ;;  %s673_s19 = smov 0  }
   0x8 LB: > { %s688_s1 = sadd.s32 4294967295, %s633_s19   ;;  %s470_s2 = sadd.s32 4294967294, %s633_s19   ;;  %s633_s19 = sphi %s673_s19, %s1016_s19   ;;  %s629_s18 = sphi %s671_s18, %s1015_s18   ;;  %s625_s17 = sphi %s669_s17, %s1014_s17   ;;  %s621_s16 = sphi %s667_s16, %s1013_s16  }
   0x9   : > { %s692_s20 = sadd.s32 1, %s633_s19   ;;  %s28_s21 = sadd.s32 1, %s629_s18 }
   0xa   : > { %s25_s22 = ssub.s32 %s633_s19, %s692_s20  ;;  %p35_p0 = scmp.ne.s32.totalorder %s629_s18, %s625_s17 }
   0xb   : > { %p26_p1 = scmp.eq.s32.totalorder %s25_s22, 0  ;;  %p36_p2 = scmp.eq.s32.totalorder %s633_s19, 0 }
   0xc   : > { %p41_p3 = scmp.ne.s32.totalorder %s625_s17, %s621_s16  ;;  %p42_p4 = scmp.eq.s32.totalorder %s688_s1, 0 }
   0xd   : > { %s704_s23 = scalar_select %p26_p1, %s629_s18, %s28_s21  }
   0xe   : > { %p37_p5 = por %p36_p2, %p35_p0  ;;  %p706_p6 = por %p42_p4, %p41_p3 }
   0xf   : > { %p107_p7 = scmp.eq.s32.totalorder %s688_s1, 7  ;;  %p113_p8 = scmp.eq.s32.totalorder %s470_s2, 7 }
  0x10   : > { %p472_p11 = scmp.ge.s32.totalorder %s633_s19, 8 }
  0x11   : > { %p711_p9 = por %p107_p7, %p35_p0  ;;  %p715_p10 = por %p113_p8, %p41_p3 }
  0x12   : > { %135 = sbr.rel (%p472_p11) target bundleno = 57 (0x39), region = 24 }
  0x13   : > { %s1011_s26 = scalar_select %p715_p10, 1, 0 }
  0x17   : > { %138 = sbr.rel (!%p37_p5) target bundleno = 57 (0x39), region = 28  ;;  %s139_s27 = sand.u32 (%p37_p5), 1, %s629_s18  }
  0x18   : > { %s144_s28 = smul.u32 (%p37_p5), 5, %s633_s19  ;;  %s725_s6 = scalar_lea.sflag (%p37_p5), [#allocation5], %s139_s27 }
  0x19   : > { %s498_s29 = smul.u32 (%p37_p5), 320, %s139_s27 }
  0x1a   : > { %s145_s30 = ssub.s32 (%p37_p5), 36, %s144_s28 }
  0x1b   : > { %p146_p12 = scmp.lt.s32.totalorder (%p37_p5), %s145_s30, 5  ;;  %s143_s7 = scalar_lea.vmem (%p37_p5), [#allocation4], %s498_s29 }
  0x1d   : > { %s1018_s30 = smov (!%p146_p12, %s145_s30), 5 }
  0x1e   : > { %s722_s4 = sshll.u32 %s1018_s30, 10 }
  0x1f   : > { %s151_s5 = ssub.s32 5120, %s722_s4 }
  0x20   : > { %152 = vsyncadd %s725_s6, %s151_s5  ;;  %p475_p13 = scmp.ne.s32.totalorder %s722_s4, 0  ;;  %s496_s8 = smul.u32 5120, %s633_s19 }
  0x21   : > { %s158_s9 = sshll.u32 %s143_s7, 4  ;;  %s547_s2 = scalar_lea.hbm %s1005_s0, 36864  ;;  %s735_s9 = int_to_ptr.vmem [resolvable:$true] %s158_s9 }
  0x22   : > { %s733_s12 = scalar_lea.hbm %s1005_s0, %s496_s8 }
  0x23   : > { %s543_s13 = scalar_lea.hbm %s733_s12, %s722_s4  ;;  %p548_p3 = scmp.lt.s32.totalorder %s733_s12, %s1005_s0 }
  0x24   : > { %p544_p0 = scmp.ne.s32.totalorder %s733_s12, %s543_s13  ;;  %p549_p4 = scmp.lt.s32.totalorder %s547_s2, %s543_s13 }
  0x26   : > { %p545_p1 = pnand %p544_p0, %p475_p13  ;;  %p550_p5 = por %p549_p4, %p548_p3 }
  0x28   : > { %p546_p2 = pneg %p545_p1 }
  0x2a   : > { %p551_p7 = pnand %p550_p5, %p546_p2 }
  0x2c   : > { %554 = shalt.err (!%p551_p7)
}
  0x2d   : > { %s555_s27 = scalar_lea.vmem %s735_s9, %s722_s4  ;;  %s635_s28 = smov [#allocation4]  }
  0x2e   : > { %p556_p8 = scmp.ne.s32.totalorder %s735_s9, %s555_s27  ;;  %s559_s29 = sshll.u32 %s635_s28, 4  ;;  %s560_s29 = int_to_ptr.vmem [resolvable:$false] %s559_s29 }
  0x2f   : > { %s561_s30 = scalar_lea.vmem %s560_s29, 10240  ;;  %p562_p0 = scmp.lt.s32.totalorder %s735_s9, %s560_s29 }
  0x30   : > { %p557_p11 = pnand %p556_p8, %p475_p13  ;;  %p563_p1 = scmp.lt.s32.totalorder %s561_s30, %s555_s27 }
  0x32   : > { %p558_p12 = pneg %p557_p11  ;;  %p564_p10 = por %p563_p1, %p562_p0 }
  0x34   : > { %p565_p3 = pnand %p564_p10, %p558_p12 }
  0x36   : > { %568 = shalt.err (!%p565_p3)
}
  0x37   : > { %s636_s5 = smov 1024   ;;  %s637_s7 = smov 64  }
  0x38   : > { %164 = dma.hbm_to_vmem [thread:$0]  (%p475_p13), %s733_s12, %s722_s4, %s735_s9, %s725_s6, %s636_s5, %s636_s5, %s637_s7  }
  0x39 PF: > { %p480_p2 = scmp.ge.s32.totalorder %s633_s19, 1  ;;  %p166_p4 = scmp.lt.s32.totalorder %s633_s19, 9 }
  0x3b   : > { %p167_p5 = pnand %p480_p2, %p166_p4 }
  0x3c   : > { %s764_s8 = sand.u32 (!%p167_p5), 1, %s625_s17  }
  0x3d   : > { %170 = sbr.rel (%p167_p5) target bundleno = 128 (0x80), region = 32  ;;  %s173_s11 = scalar_lea.sflag (!%p167_p5), [#allocation5], %s764_s8 }
  0x3e   : > { %s499_s10 = smul.u32 (!%p167_p5), 320, %s764_s8 }
  0x40   : > { %s770_s13 = scalar_lea.vmem (!%p167_p5), [#allocation4], %s499_s10 }
  0x42   : > { %612 = dma.done.wait (%p706_p6), %s173_s11, 5120  }
  0x43   : > { %614 = vsyncadd (%p706_p6), %s173_s11, 4294962176  ;;  %s211_s4 = sld [smem:[#allocation2]]  ;;  %v213_v0 = vld [vmem:[%s770_s13] sm:$0xff]  ;;  %v214_v2 = vld [vmem:[%s770_s13 + $0x8] sm:$0xff]  ;;  %s811_s24 = scalar_lea.vmem [#allocation7], %s499_s10 }
  0x44   : > { %s212_s6 = sld [smem:[#allocation3]]  ;;  %v215_v3 = vld [vmem:[%s770_s13 + $0x10] sm:$0xff]  ;;  %v216_v8 = vld [vmem:[%s770_s13 + $0x18] sm:$0xff]  ;;  %v217_v9 = vld [vmem:[%s770_s13 + $0x20] sm:$0xff]  ;;  %s376_s9 = scalar_lea.sflag [#allocation6], %s764_s8 }
  0x45   : > { %v218_v10 = vld [vmem:[%s770_s13 + $0x28] sm:$0xff]  ;;  %v219_v14 = vld [vmem:[%s770_s13 + $0x30] sm:$0xff]  ;;  %v220_v15 = vld [vmem:[%s770_s13 + $0x38] sm:$0xff]  ;;  %s383_s12 = smul.u32 (%p711_p9), 5, %s688_s1 }
  0x46   : > { %v221_v16 = vld [vmem:[%s770_s13 + $0x40] sm:$0xff]  ;;  %v222_v21 = vld [vmem:[%s770_s13 + $0x48] sm:$0xff]  ;;  %v223_v22 = vld [vmem:[%s770_s13 + $0x50] sm:$0xff] }
  0x47   : > { %v224_v23 = vld [vmem:[%s770_s13 + $0x58] sm:$0xff]  ;;  %v225_v28 = vld [vmem:[%s770_s13 + $0x60] sm:$0xff]  ;;  %v226_v29 = vld [vmem:[%s770_s13 + $0x68] sm:$0xff]  ;;  %s384_s14 = ssub.s32 (%p711_p9), 36, %s383_s12 }
  0x48   : > { %v227_v30 = vld [vmem:[%s770_s13 + $0x70] sm:$0xff]  ;;  %v228_v35 = vld [vmem:[%s770_s13 + $0x78] sm:$0xff]  ;;  %v229_v40 = vld [vmem:[%s770_s13 + $0x80] sm:$0xff]  ;;  %p385_p6 = scmp.lt.s32.totalorder (%p711_p9), %s384_s14, 5 }
  0x49   : > { %v777_v1 = vstv %s211_s4  ;;  %v230_v41 = vld [vmem:[%s770_s13 + $0x88] sm:$0xff]  ;;  %v231_v42 = vld [vmem:[%s770_s13 + $0x90] sm:$0xff]  ;;  %v232_v47 = vld [vmem:[%s770_s13 + $0x98] sm:$0xff] }
  0x4a   : > { %v254_v4 = vmul.f32 %v777_v1, %v213_v0  ;;  %v782_v5 = vstv %s212_s6  ;;  %v255_v6 = vmul.f32 %v777_v1, %v214_v2  ;;  %v256_v7 = vmul.f32 %v777_v1, %v215_v3  ;;  %v233_v48 = vld [vmem:[%s770_s13 + $0xa0] sm:$0xff]  ;;  %v234_v49 = vld [vmem:[%s770_s13 + $0xa8] sm:$0xff]  ;;  %v235_v54 = vld [vmem:[%s770_s13 + $0xb0] sm:$0xff] }
  0x4b   : > { %v257_v11 = vmul.f32 %v777_v1, %v216_v8  ;;  %v258_v12 = vmul.f32 %v777_v1, %v217_v9  ;;  %v259_v13 = vmul.f32 %v777_v1, %v218_v10  ;;  %v260_v20 = vmul.f32 %v777_v1, %v219_v14  ;;  %v236_v59 = vld [vmem:[%s770_s13 + $0xb8] sm:$0xff]  ;;  %v237_v0 = vld [vmem:[%s770_s13 + $0xc0] sm:$0xff]  ;;  %v238_v2 = vld [vmem:[%s770_s13 + $0xc8] sm:$0xff] }
  0x4c   : > { %v295_v17 = vadd.f32 %v782_v5, %v254_v4  ;;  %v296_v18 = vadd.f32 %v782_v5, %v255_v6  ;;  %v297_v19 = vadd.f32 %v782_v5, %v256_v7  ;;  %v261_v27 = vmul.f32 %v777_v1, %v220_v15  ;;  %v239_v3 = vld [vmem:[%s770_s13 + $0xd0] sm:$0xff]  ;;  %v240_v9 = vld [vmem:[%s770_s13 + $0xd8] sm:$0xff]  ;;  %v241_v10 = vld [vmem:[%s770_s13 + $0xe0] sm:$0xff] }
  0x4d   : > { %v298_v24 = vadd.f32 %v782_v5, %v257_v11  ;;  %v299_v25 = vadd.f32 %v782_v5, %v258_v12  ;;  %v300_v26 = vadd.f32 %v782_v5, %v259_v13  ;;  %v301_v31 = vadd.f32 %v782_v5, %v260_v20  ;;  %v242_v11 = vld [vmem:[%s770_s13 + $0xe8] sm:$0xff] }
  0x4e   : > { %335 = vst [vmem:[%s811_s24] sm:$0xff] %v295_v17  ;;  %336 = vst [vmem:[%s811_s24 + $0x8] sm:$0xff] %v296_v18  ;;  %v262_v32 = vmul.f32 %v777_v1, %v221_v16  ;;  %v263_v33 = vmul.f32 %v777_v1, %v222_v21  ;;  %v264_v34 = vmul.f32 %v777_v1, %v223_v22  ;;  %v243_v16 = vld [vmem:[%s770_s13 + $0xf0] sm:$0xff]  ;;  %v244_v21 = vld [vmem:[%s770_s13 + $0xf8] sm:$0xff] }
  0x4f   : > { %337 = vst [vmem:[%s811_s24 + $0x10] sm:$0xff] %v297_v19  ;;  %338 = vst [vmem:[%s811_s24 + $0x18] sm:$0xff] %v298_v24  ;;  %v302_v36 = vadd.f32 %v782_v5, %v261_v27  ;;  %v265_v37 = vmul.f32 %v777_v1, %v224_v23  ;;  %v266_v38 = vmul.f32 %v777_v1, %v225_v28  ;;  %v246_v27 = vld [vmem:[%s770_s13 + $0x108] sm:$0xff]  ;;  %v247_v28 = vld [vmem:[%s770_s13 + $0x110] sm:$0xff] }
  0x50   : > { %339 = vst [vmem:[%s811_s24 + $0x20] sm:$0xff] %v299_v25  ;;  %340 = vst [vmem:[%s811_s24 + $0x28] sm:$0xff] %v300_v26  ;;  %v267_v39 = vmul.f32 %v777_v1, %v226_v29  ;;  %v303_v43 = vadd.f32 %v782_v5, %v262_v32  ;;  %v304_v44 = vadd.f32 %v782_v5, %v263_v33  ;;  %v245_v26 = vld [vmem:[%s770_s13 + $0x100] sm:$0xff]  ;;  %v248_v33 = vld [vmem:[%s770_s13 + $0x118] sm:$0xff] }
  0x51   : > { %341 = vst [vmem:[%s811_s24 + $0x30] sm:$0xff] %v301_v31  ;;  %v305_v45 = vadd.f32 %v782_v5, %v264_v34  ;;  %v268_v46 = vmul.f32 %v777_v1, %v227_v30  ;;  %342 = vst [vmem:[%s811_s24 + $0x38] sm:$0xff] %v302_v36  ;;  %v306_v50 = vadd.f32 %v782_v5, %v265_v37  ;;  %v249_v34 = vld [vmem:[%s770_s13 + $0x120] sm:$0xff] }
  0x52   : > { %v307_v51 = vadd.f32 %v782_v5, %v266_v38  ;;  %v308_v52 = vadd.f32 %v782_v5, %v267_v39  ;;  %v269_v53 = vmul.f32 %v777_v1, %v228_v35  ;;  %343 = vst [vmem:[%s811_s24 + $0x40] sm:$0xff] %v303_v43  ;;  %344 = vst [vmem:[%s811_s24 + $0x48] sm:$0xff] %v304_v44  ;;  %v250_v35 = vld [vmem:[%s770_s13 + $0x128] sm:$0xff] }
  0x53   : > { %345 = vst [vmem:[%s811_s24 + $0x50] sm:$0xff] %v305_v45  ;;  %v309_v55 = vadd.f32 %v782_v5, %v268_v46  ;;  %v270_v56 = vmul.f32 %v777_v1, %v229_v40  ;;  %v271_v57 = vmul.f32 %v777_v1, %v230_v41  ;;  %v272_v58 = vmul.f32 %v777_v1, %v231_v42  ;;  %v251_v40 = vld [vmem:[%s770_s13 + $0x130] sm:$0xff]  ;;  %v252_v45 = vld [vmem:[%s770_s13 + $0x138] sm:$0xff] }
  0x54   : > { %346 = vst [vmem:[%s811_s24 + $0x58] sm:$0xff] %v306_v50  ;;  %347 = vst [vmem:[%s811_s24 + $0x60] sm:$0xff] %v307_v51  ;;  %v310_v60 = vadd.f32 %v782_v5, %v269_v53  ;;  %v273_v61 = vmul.f32 %v777_v1, %v232_v47  ;;  %v274_v62 = vmul.f32 %v777_v1, %v233_v48 }
  0x55   : > { %348 = vst [vmem:[%s811_s24 + $0x68] sm:$0xff] %v308_v52  ;;  %v275_v63 = vmul.f32 %v777_v1, %v234_v49  ;;  %349 = vst [vmem:[%s811_s24 + $0x70] sm:$0xff] %v309_v55  ;;  %v311_v4 = vadd.f32 %v782_v5, %v270_v56  ;;  %v312_v6 = vadd.f32 %v782_v5, %v271_v57 }
  0x56   : > { %v313_v7 = vadd.f32 %v782_v5, %v272_v58  ;;  %v276_v8 = vmul.f32 %v777_v1, %v235_v54  ;;  %350 = vst [vmem:[%s811_s24 + $0x78] sm:$0xff] %v310_v60  ;;  %v314_v12 = vadd.f32 %v782_v5, %v273_v61  ;;  %v315_v13 = vadd.f32 %v782_v5, %v274_v62 }
  0x57   : > { %v316_v14 = vadd.f32 %v782_v5, %v275_v63  ;;  %v277_v15 = vmul.f32 %v777_v1, %v236_v59  ;;  %351 = vst [vmem:[%s811_s24 + $0x80] sm:$0xff] %v311_v4  ;;  %352 = vst [vmem:[%s811_s24 + $0x88] sm:$0xff] %v312_v6  ;;  %v278_v18 = vmul.f32 %v777_v1, %v237_v0 }
  0x58   : > { %353 = vst [vmem:[%s811_s24 + $0x90] sm:$0xff] %v313_v7  ;;  %v317_v17 = vadd.f32 %v782_v5, %v276_v8  ;;  %v279_v19 = vmul.f32 %v777_v1, %v238_v2  ;;  %v280_v20 = vmul.f32 %v777_v1, %v239_v3  ;;  %354 = vst [vmem:[%s811_s24 + $0x98] sm:$0xff] %v314_v12 }
  0x59   : > { %355 = vst [vmem:[%s811_s24 + $0xa0] sm:$0xff] %v315_v13  ;;  %356 = vst [vmem:[%s811_s24 + $0xa8] sm:$0xff] %v316_v14  ;;  %v318_v22 = vadd.f32 %v782_v5, %v277_v15  ;;  %v281_v23 = vmul.f32 %v777_v1, %v240_v9  ;;  %v282_v24 = vmul.f32 %v777_v1, %v241_v10 }
  0x5a   : > { %v283_v25 = vmul.f32 %v777_v1, %v242_v11  ;;  %357 = vst [vmem:[%s811_s24 + $0xb0] sm:$0xff] %v317_v17  ;;  %v319_v29 = vadd.f32 %v782_v5, %v278_v18  ;;  %v320_v30 = vadd.f32 %v782_v5, %v279_v19  ;;  %v321_v31 = vadd.f32 %v782_v5, %v280_v20 }
  0x5b   : > { %v284_v32 = vmul.f32 %v777_v1, %v243_v16  ;;  %358 = vst [vmem:[%s811_s24 + $0xb8] sm:$0xff] %v318_v22  ;;  %v322_v36 = vadd.f32 %v782_v5, %v281_v23  ;;  %v323_v37 = vadd.f32 %v782_v5, %v282_v24  ;;  %v285_v39 = vmul.f32 %v777_v1, %v244_v21 }
  0x5c   : > { %v324_v38 = vadd.f32 %v782_v5, %v283_v25  ;;  %359 = vst [vmem:[%s811_s24 + $0xc0] sm:$0xff] %v319_v29  ;;  %360 = vst [vmem:[%s811_s24 + $0xc8] sm:$0xff] %v320_v30  ;;  %v286_v42 = vmul.f32 %v777_v1, %v245_v26  ;;  %v287_v43 = vmul.f32 %v777_v1, %v246_v27 }
  0x5d   : > { %361 = vst [vmem:[%s811_s24 + $0xd0] sm:$0xff] %v321_v31  ;;  %v325_v41 = vadd.f32 %v782_v5, %v284_v32  ;;  %v288_v44 = vmul.f32 %v777_v1, %v247_v28  ;;  %362 = vst [vmem:[%s811_s24 + $0xd8] sm:$0xff] %v322_v36  ;;  %v326_v46 = vadd.f32 %v782_v5, %v285_v39 }
  0x5e   : > { %363 = vst [vmem:[%s811_s24 + $0xe0] sm:$0xff] %v323_v37  ;;  %364 = vst [vmem:[%s811_s24 + $0xe8] sm:$0xff] %v324_v38  ;;  %v289_v47 = vmul.f32 %v777_v1, %v248_v33  ;;  %v290_v48 = vmul.f32 %v777_v1, %v249_v34  ;;  %v291_v49 = vmul.f32 %v777_v1, %v250_v35 }
  0x5f   : > { %365 = vst [vmem:[%s811_s24 + $0xf0] sm:$0xff] %v325_v41  ;;  %v327_v50 = vadd.f32 %v782_v5, %v286_v42  ;;  %v328_v51 = vadd.f32 %v782_v5, %v287_v43  ;;  %v329_v52 = vadd.f32 %v782_v5, %v288_v44  ;;  %v292_v53 = vmul.f32 %v777_v1, %v251_v40 }
  0x60   : > { %366 = vst [vmem:[%s811_s24 + $0xf8] sm:$0xff] %v326_v46  ;;  %v330_v54 = vadd.f32 %v782_v5, %v289_v47  ;;  %v331_v55 = vadd.f32 %v782_v5, %v290_v48  ;;  %v332_v56 = vadd.f32 %v782_v5, %v291_v49  ;;  %v293_v57 = vmul.f32 %v777_v1, %v252_v45  ;;  %382 = sbr.rel (!%p711_p9) target bundleno = 128 (0x80), region = 40 }
  0x61   : > { %367 = vst [vmem:[%s811_s24 + $0x100] sm:$0xff] %v327_v50  ;;  %368 = vst [vmem:[%s811_s24 + $0x108] sm:$0xff] %v328_v51  ;;  %v333_v58 = vadd.f32 %v782_v5, %v292_v53 }
  0x62   : > { %369 = vst [vmem:[%s811_s24 + $0x110] sm:$0xff] %v329_v52  ;;  %370 = vst [vmem:[%s811_s24 + $0x118] sm:$0xff] %v330_v54  ;;  %v334_v59 = vadd.f32 %v782_v5, %v293_v57 }
  0x63   : > { %371 = vst [vmem:[%s811_s24 + $0x120] sm:$0xff] %v331_v55  ;;  %372 = vst [vmem:[%s811_s24 + $0x128] sm:$0xff] %v332_v56 }
  0x64   : > { %373 = vst [vmem:[%s811_s24 + $0x130] sm:$0xff] %v333_v58  ;;  %374 = vst [vmem:[%s811_s24 + $0x138] sm:$0xff] %v334_v59 }
  0x65   : > { %s1020_s14 = smov (!%p385_p6, %s384_s14), 5 }
  0x66   : > { %s948_s15 = sshll.u32 %s1020_s14, 10 }
  0x67   : > { %s390_s2 = ssub.s32 5120, %s948_s15 }
  0x68   : > { %391 = vsyncadd %s376_s9, %s390_s2  ;;  %p483_p10 = scmp.ne.s32.totalorder %s948_s15, 0  ;;  %s497_s25 = smul.u32 5120, %s688_s1 }
  0x69   : > { %s397_s21 = sshll.u32 %s811_s24, 4  ;;  %s638_s30 = smov [#allocation7]   ;;  %s961_s21 = int_to_ptr.vmem [resolvable:$true] %s397_s21 }
  0x6a   : > { %s959_s28 = scalar_lea.hbm %s1008_s3, %s497_s25  ;;  %s569_s29 = scalar_lea.vmem %s961_s21, %s948_s15 }
  0x6b   : > { %p570_p9 = scmp.ne.s32.totalorder %s961_s21, %s569_s29  ;;  %s573_s5 = sshll.u32 %s638_s30, 4  ;;  %s574_s5 = int_to_ptr.vmem [resolvable:$false] %s573_s5 }
  0x6c   : > { %s575_s1 = scalar_lea.vmem %s574_s5, 10240  ;;  %p576_p8 = scmp.lt.s32.totalorder %s961_s21, %s574_s5 }
  0x6d   : > { %p571_p13 = pnand %p570_p9, %p483_p10  ;;  %p577_p11 = scmp.lt.s32.totalorder %s575_s1, %s569_s29 }
  0x6f   : > { %p572_p7 = pneg %p571_p13  ;;  %p578_p12 = por %p577_p11, %p576_p8 }
  0x71   : > { %p579_p0 = pnand %p578_p12, %p572_p7 }
  0x73   : > { %582 = shalt.err (!%p579_p0)
}
  0x74   : > { %s583_s7 = scalar_lea.hbm %s959_s28, %s948_s15  ;;  %s587_s13 = scalar_lea.hbm %s1008_s3, 36864 }
  0x75   : > { %p584_p1 = scmp.ne.s32.totalorder %s959_s28, %s583_s7  ;;  %p588_p4 = scmp.lt.s32.totalorder %s959_s28, %s1008_s3 }
  0x76   : > { %p589_p5 = scmp.lt.s32.totalorder %s587_s13, %s583_s7 }
  0x77   : > { %p585_p3 = pnand %p584_p1, %p483_p10 }
  0x78   : > { %p590_p6 = por %p589_p5, %p588_p4 }
  0x79   : > { %p586_p2 = pneg %p585_p3 }
  0x7b   : > { %p591_p9 = pnand %p590_p6, %p586_p2 }
  0x7d   : > { %594 = shalt.err (!%p591_p9)
}
  0x7e   : > { %s639_s24 = smov 1024   ;;  %s640_s12 = smov 64  }
  0x7f   : > { %403 = dma.vmem_to_hbm [thread:$0]  (%p483_p10), %s961_s21, %s948_s15, %s959_s28, %s376_s9, %s639_s24, %s639_s24, %s640_s12  }
  0x80 PF: > { %p506_p13 = scmp.ge.s32.totalorder %s633_s19, 2  ;;  %s412_s14 = sand.u32 1, %s621_s16  }
  0x81   : > { %p1012_p7 = scmp.ne.s32.totalorder %s1011_s26, 0  ;;  %s413_s2 = scalar_lea.sflag [#allocation6], %s412_s14 }
  0x83   : > { %p503_p8 = pnand %p506_p13, %p1012_p7 }
  0x85   : > { %p504_p11 = pneg %p503_p8 }
  0x87   : > { %616 = dma.done.wait (%p504_p11), %s413_s2, 5120  }
  0x88   : > { %618 = vsyncadd (%p504_p11), %s413_s2, 4294962176  ;;  %p18_p12 = scmp.ge.s32.totalorder %s692_s20, 10   ;;  %s1013_s16 = smov %s625_s17 }
  0x89   : > { %s1014_s17 = smov %s629_s18  ;;  %s1015_s18 = smov %s704_s23 }
  0x8a   : > { %s1016_s19 = smov %s692_s20  ;;  %20 = sbr.rel (!%p18_p12) target bundleno = 8 (0x8), region = 77 }
  0x8f   :  { %418 = vsyncpa [#allocation5], 1 }
  0x90   :  { %420 = vsyncpa [#allocation5 + $0x1], 1 }
  0x91   :  { %421 = vsyncpa [#allocation6], 1 }
  0x92   :  { %423 = vsyncpa [#allocation6 + $0x1], 1 }

</bundles_post_ra>
